<compile_context>
chip_gen: v7x
topology: tpu7x:2x2x1
jax: 0.10.0
libtpu: 0.0.40
codegen_flags: <defaults>
</compile_context>

<pallas_src>
import jax
import jax.numpy as jnp
import numpy as np
from jax.experimental import pallas as pl
from jax.experimental.pallas import tpu as pltpu

BN_EPS = 1e-5


def _round_up(n, m):
    return (n + m - 1) // m * m


def _make_awcr_kernel(B, C, Ch, RC, HW, off_w2t, off_wbn, off_bias):
    def kernel(x_ref, p_ref, o_ref):
        x = x_ref[...]                                          # (B, C, HW)

        # ---- ChannelAttention MLP (lane-major, batched over B) ----------
        # 1/HW is folded into w1^T at pack time -> plain sum here.
        pooled = jnp.sum(x, axis=2)                             # (B, C)
        w1t = p_ref[0:C, 0:Ch]                                  # (C, Ch)
        w2t = p_ref[off_w2t:off_w2t + Ch, 0:C]                  # (Ch, C)
        h = jnp.maximum(
            jnp.dot(pooled, w1t, preferred_element_type=jnp.float32), 0.0)   # (B, Ch)
        y = jax.nn.sigmoid(
            jnp.dot(h, w2t, preferred_element_type=jnp.float32))             # (B, C)

        # ---- BN-folded conv weight with attention folded in, built as a
        #      block-diagonal (B*RC, B*C) matrix (~1 vreg of VPU work) -------
        wbn = p_ref[off_wbn:off_wbn + RC, 0:C]                  # (RC, C)
        bias = p_ref[off_bias:off_bias + B * RC, 0:1]           # (B*RC, 1) batch-tiled

        zero_blk = jnp.zeros((RC, C), jnp.float32)
        block_rows = []
        for b in range(B):                                      # B tiny & static
            wy_b = wbn * y[b:b + 1, :]                          # (RC, C)
            row = [wy_b if j == b else zero_blk for j in range(B)]
            block_rows.append(jnp.concatenate(row, axis=1))     # (RC, B*C)
        w_blk = jnp.concatenate(block_rows, axis=0)             # (B*RC, B*C)

        # ---- square x once, stack batches along sublanes (C % 8 == 0) -----
        xsq = x * x                                             # (B, C, HW)
        x2 = jnp.concatenate([xsq[b] for b in range(B)], axis=0)  # (B*C, HW)

        # ---- single MXU push + single dense (B*RC, HW) store --------------
        conv = jnp.dot(w_blk, x2, preferred_element_type=jnp.float32) + bias
        o_ref[...] = jnp.maximum(conv, 0.0)

    return kernel


def make_awcr(params, input_shape):
    """Pack parameters once (BN folded, 1/HW folded, bias batch-tiled) and
    return a jitted apply(x) that closes over the packed constant."""
    B, C, H, W = input_shape
    HW = H * W
    RC = params["wconv"].shape[0]
    Ch = params["w1"].shape[0]

    assert C % 8 == 0, "C must be a multiple of 8 for aligned param segments"
    assert HW % 128 == 0, "H*W should be lane-aligned for a dense output slab"

    # ---- one-time host-side exact folds (BN eval stats into conv w/b) ----
    scale = np.asarray(params["gamma"]) / np.sqrt(np.asarray(params["rvar"]) + BN_EPS)
    wbn = scale * np.asarray(params["wconv"])                                # (RC, C)
    bbn = scale * (np.asarray(params["bconv"]) - np.asarray(params["rmean"])) \
        + np.asarray(params["beta"])                                         # (RC, 1)

    # ---- pack params: 8-aligned row segments, lane-dense 128-col width ----
    off_w2t = C
    off_wbn = _round_up(C + Ch, 8)
    off_bias = _round_up(off_wbn + RC, 8)
    p_rows = _round_up(off_bias + B * RC, 8)
    p_cols = 128
    assert off_w2t % 8 == 0 and off_wbn % 8 == 0 and off_bias % 8 == 0

    P = np.zeros((p_rows, p_cols), np.float32)
    P[0:C, 0:Ch] = np.asarray(params["w1"]).T * (1.0 / HW)       # w1^T * 1/HW
    P[off_w2t:off_w2t + Ch, 0:C] = np.asarray(params["w2"]).T    # w2^T
    P[off_wbn:off_wbn + RC, 0:C] = wbn                           # folded conv weight
    P[off_bias:off_bias + B * RC, 0] = np.tile(bbn[:, 0], B)     # folded bias, tiled
    P = jnp.asarray(P)

    kernel = _make_awcr_kernel(B, C, Ch, RC, HW, off_w2t, off_wbn, off_bias)

    cost = pl.CostEstimate(
        flops=2 * (B * RC) * (B * C) * HW + 4 * B * C * Ch + 3 * B * C * HW,
        transcendentals=B * C,
        bytes_accessed=4 * (B * C * HW + p_rows * p_cols + B * RC * HW),
    )

    pallas_fn = pl.pallas_call(
        kernel,
        out_shape=jax.ShapeDtypeStruct((B * RC, HW), jnp.float32),
        grid_spec=pltpu.PrefetchScalarGridSpec(
            num_scalar_prefetch=0,
            grid=(1,),
            in_specs=[
                pl.BlockSpec((B, C, HW), lambda i: (0, 0, 0)),      # x (whole problem)
                pl.BlockSpec((p_rows, p_cols), lambda i: (0, 0)),   # packed params
            ],
            out_specs=pl.BlockSpec((B * RC, HW), lambda i: (0, 0)),
        ),
        compiler_params=pltpu.CompilerParams(dimension_semantics=("arbitrary",)),
        cost_estimate=cost,
    )

    @jax.jit
    def apply(x_nchw):
        x = x_nchw.reshape(B, C, HW).astype(jnp.float32)
        out = pallas_fn(x, P)
        return out.reshape(B, RC, H, W)

    return apply


def reference(x, p):
    """Pure-JAX reference mirroring the PyTorch forward (BN in eval mode)."""
    pooled = jnp.mean(x, axis=(2, 3))                      # (B, C)
    h = jnp.maximum(pooled @ p["w1"].T, 0.0)               # (B, Ch)
    y = jax.nn.sigmoid(h @ p["w2"].T)                      # (B, C)
    att = x * y[:, :, None, None]                          # channel_attention(x)
    weighted = x * att                                     # x * attention_weights
    conv = jnp.einsum("oc,bchw->bohw", p["wconv"], weighted) \
        + p["bconv"].reshape(1, -1, 1, 1)
    rm = p["rmean"].reshape(1, -1, 1, 1)
    rv = p["rvar"].reshape(1, -1, 1, 1)
    g = p["gamma"].reshape(1, -1, 1, 1)
    b = p["beta"].reshape(1, -1, 1, 1)
    bn = (conv - rm) / jnp.sqrt(rv + BN_EPS) * g + b
    return jnp.maximum(bn, 0.0)


if __name__ == "__main__":
    # in_channels must be divisible by reduction_factor=12 (and //16 nonzero)
    B, C, H, W = 2, 48, 16, 16
    reduction_factor, reduction_ratio_attention = 12, 16
    RC = C // reduction_factor            # 4 reduced channels
    Ch = C // reduction_ratio_attention   # 3 hidden units in attention MLP

    key = jax.random.PRNGKey(0)
    ks = jax.random.split(key, 9)
    x = jax.random.normal(ks[0], (B, C, H, W), jnp.float32)

    params = dict(
        w1=0.1 * jax.random.normal(ks[1], (Ch, C), jnp.float32),     # Linear(C->Ch).weight
        w2=0.1 * jax.random.normal(ks[2], (C, Ch), jnp.float32),     # Linear(Ch->C).weight
        wconv=0.1 * jax.random.normal(ks[3], (RC, C), jnp.float32),  # Conv2d 1x1 weight (RC,C)
        bconv=0.1 * jax.random.normal(ks[4], (RC, 1), jnp.float32),  # Conv2d bias
        gamma=1.0 + 0.1 * jax.random.normal(ks[5], (RC, 1), jnp.float32),
        beta=0.1 * jax.random.normal(ks[6], (RC, 1), jnp.float32),
        rmean=0.1 * jax.random.normal(ks[7], (RC, 1), jnp.float32),
        rvar=1.0 + 0.1 * jax.random.uniform(ks[8], (RC, 1), jnp.float32),
    )

    # Build once: packs params / folds BN on the host a single time.
    awcr = make_awcr(params, (B, C, H, W))

    out = awcr(x)
    jax.block_until_ready(out)

    ref = reference(x, params)
    np.testing.assert_allclose(np.asarray(out), np.asarray(ref), rtol=1e-4, atol=1e-4)
    print("KERNEL_OK")
</pallas_src>

<mosaic_0001>
module attributes {stable_mosaic.version = 11 : i64} {
  func.func @kernel(%arg0: i32, %arg1: memref<2x48x256xf32, #tpu.memory_space<vmem>>, %arg2: memref<72x128xf32, #tpu.memory_space<vmem>>, %arg3: memref<8x256xf32, #tpu.memory_space<vmem>>) attributes {dimension_semantics = [#tpu.dimension_semantics<arbitrary>], iteration_bounds = array<i64: 1>, scalar_prefetch = 0 : i64, scratch_operands = 0 : i64, tpu.core_type = #tpu.core_type<tc>, window_params = [{pipeline_mode = #tpu.pipeline_mode<synchronous>, transform_indices = @transform_0, window_bounds = array<i64: 2, 48, 256>}, {pipeline_mode = #tpu.pipeline_mode<synchronous>, transform_indices = @transform_1, window_bounds = array<i64: 72, 128>}, {pipeline_mode = #tpu.pipeline_mode<synchronous>, transform_indices = @transform_2, window_bounds = array<i64: 8, 256>}]} {
    %c0 = arith.constant 0 : index
    %c0_0 = arith.constant 0 : index
    %c0_1 = arith.constant 0 : index
    %0 = vector.load %arg1[%c0, %c0_0, %c0_1] : memref<2x48x256xf32, #tpu.memory_space<vmem>>, vector<2x48x256xf32>
    %cst = arith.constant dense<0.000000e+00> : vector<2x48xf32>
    %1 = vector.multi_reduction <add>, %0, %cst [2] : vector<2x48x256xf32> to vector<2x48xf32>
    %c0_2 = arith.constant 0 : index
    %c0_3 = arith.constant 0 : index
    %2 = vector.load %arg2[%c0_2, %c0_3] : memref<72x128xf32, #tpu.memory_space<vmem>>, vector<48x3xf32>
    %c48 = arith.constant 48 : index
    %c0_4 = arith.constant 0 : index
    %3 = vector.load %arg2[%c48, %c0_4] : memref<72x128xf32, #tpu.memory_space<vmem>>, vector<3x48xf32>
    %cst_5 = arith.constant dense<0.000000e+00> : vector<2x3xf32>
    %4 = tpu.matmul %1, %2, %cst_5 {dimension_numbers = #tpu.dot_dimension_numbers<[1], [0], [0], [1], [0, 0, 1, 1], [], []>} : vector<2x48xf32>, vector<48x3xf32>, vector<2x3xf32> -> vector<2x3xf32>
    %cst_6 = arith.constant 0.000000e+00 : f32
    %5 = vector.broadcast %cst_6 : f32 to vector<2x3xf32>
    %6 = arith.maximumf %4, %5 : vector<2x3xf32>
    %cst_7 = arith.constant dense<0.000000e+00> : vector<2x48xf32>
    %7 = tpu.matmul %6, %3, %cst_7 {dimension_numbers = #tpu.dot_dimension_numbers<[1], [0], [0], [1], [0, 0, 1, 1], [], []>} : vector<2x3xf32>, vector<3x48xf32>, vector<2x48xf32> -> vector<2x48xf32>
    %8 = arith.negf %7 : vector<2x48xf32>
    %9 = math.exp %8 : vector<2x48xf32>
    %cst_8 = arith.constant 1.000000e+00 : f32
    %10 = vector.broadcast %cst_8 : f32 to vector<2x48xf32>
    %11 = arith.addf %10, %9 : vector<2x48xf32>
    %12 = arith.divf %10, %11 : vector<2x48xf32>
    %c56 = arith.constant 56 : index
    %c0_9 = arith.constant 0 : index
    %13 = vector.load %arg2[%c56, %c0_9] : memref<72x128xf32, #tpu.memory_space<vmem>>, vector<4x48xf32>
    %c64 = arith.constant 64 : index
    %c0_10 = arith.constant 0 : index
    %14 = vector.load %arg2[%c64, %c0_10] : memref<72x128xf32, #tpu.memory_space<vmem>>, vector<8x1xf32>
    %cst_11 = arith.constant 0.000000e+00 : f32
    %15 = vector.broadcast %cst_11 : f32 to vector<4x48xf32>
    %16 = vector.extract_strided_slice %12 {offsets = [0, 0], sizes = [1, 48], strides = [1, 1]} : vector<2x48xf32> to vector<1x48xf32>
    %17 = vector.broadcast %16 : vector<1x48xf32> to vector<4x48xf32>
    %18 = arith.mulf %13, %17 : vector<4x48xf32>
    %19 = tpu.concatenate %18, %15 in 1 : vector<4x48xf32>, vector<4x48xf32> -> vector<4x96xf32>
    %20 = vector.extract_strided_slice %12 {offsets = [1, 0], sizes = [1, 48], strides = [1, 1]} : vector<2x48xf32> to vector<1x48xf32>
    %21 = vector.broadcast %20 : vector<1x48xf32> to vector<4x48xf32>
    %22 = arith.mulf %13, %21 : vector<4x48xf32>
    %23 = tpu.concatenate %15, %22 in 1 : vector<4x48xf32>, vector<4x48xf32> -> vector<4x96xf32>
    %24 = tpu.concatenate %19, %23 in 0 : vector<4x96xf32>, vector<4x96xf32> -> vector<8x96xf32>
    %25 = arith.mulf %0, %0 : vector<2x48x256xf32>
    %26 = vector.extract_strided_slice %25 {offsets = [0, 0, 0], sizes = [1, 48, 256], strides = [1, 1, 1]} : vector<2x48x256xf32> to vector<1x48x256xf32>
    %27 = vector.shape_cast %26 : vector<1x48x256xf32> to vector<48x256xf32>
    %28 = vector.extract_strided_slice %25 {offsets = [1, 0, 0], sizes = [1, 48, 256], strides = [1, 1, 1]} : vector<2x48x256xf32> to vector<1x48x256xf32>
    %29 = vector.shape_cast %28 : vector<1x48x256xf32> to vector<48x256xf32>
    %30 = tpu.concatenate %27, %29 in 0 : vector<48x256xf32>, vector<48x256xf32> -> vector<96x256xf32>
    %cst_12 = arith.constant dense<0.000000e+00> : vector<8x256xf32>
    %31 = tpu.matmul %24, %30, %cst_12 {dimension_numbers = #tpu.dot_dimension_numbers<[1], [0], [0], [1], [0, 0, 1, 1], [], []>} : vector<8x96xf32>, vector<96x256xf32>, vector<8x256xf32> -> vector<8x256xf32>
    %32 = vector.broadcast %14 : vector<8x1xf32> to vector<8x256xf32>
    %33 = arith.addf %31, %32 : vector<8x256xf32>
    %cst_13 = arith.constant 0.000000e+00 : f32
    %34 = vector.broadcast %cst_13 : f32 to vector<8x256xf32>
    %35 = arith.maximumf %33, %34 : vector<8x256xf32>
    %c0_14 = arith.constant 0 : index
    %c0_15 = arith.constant 0 : index
    %36 = vector.load %arg3[%c0_14, %c0_15] : memref<8x256xf32, #tpu.memory_space<vmem>>, vector<8x256xf32>
    tpu.vector_store %arg3[%c0_14, %c0_15], %35 {strides = array<i32>} : memref<8x256xf32, #tpu.memory_space<vmem>>, vector<8x256xf32>,
    return
  }
  func.func @transform_0(%arg0: i32) -> (i32, i32, i32) {
    %c0_i32 = arith.constant 0 : i32
    %c0_i32_0 = arith.constant 0 : i32
    %c0_i32_1 = arith.constant 0 : i32
    %c0_i32_2 = arith.constant 0 : i32
    return %c0_i32, %c0_i32_0, %c0_i32_1 : i32, i32, i32
  }
  func.func @transform_1(%arg0: i32) -> (i32, i32) {
    %c0_i32 = arith.constant 0 : i32
    %c0_i32_0 = arith.constant 0 : i32
    %c0_i32_1 = arith.constant 0 : i32
    return %c0_i32, %c0_i32_0 : i32, i32
  }
  func.func @transform_2(%arg0: i32) -> (i32, i32) {
    %c0_i32 = arith.constant 0 : i32
    %c0_i32_0 = arith.constant 0 : i32
    %c0_i32_1 = arith.constant 0 : i32
    return %c0_i32, %c0_i32_0 : i32, i32
  }
}

</mosaic_0001>

<bundles_post_ra>
// kernel: apply.1
= control target key start
LH: loop header
LB: loop body
LE: loop exit
PB: predicated region body
PF: predicated region fallthrough
CT: control target
= control target key end

     0   :  { %v533_v39 = vmov 0.0|0.0   ;;  %vm534_vm0 = vmmov 0   ;;  %v535_v46 = vmov 0.0   ;;  %v90_v48 = vlaneseq  ;;  %s537_s18 = smov 48   ;;  %s801_s0 = inlined_call_operand.vmem [shape: f32[2,48,256], index: 0, kind: input, shape index: {}]   ;;  %s802_s1 = inlined_call_operand.vmem [shape: f32[72,128], index: 1, kind: input, shape index: {}]   ;;  %s803_s2 = inlined_call_operand.vmem [shape: f32[8,256], index: 2, kind: output, shape index: {}]  }
   0x1   :  { %v556_v0 = vld [vmem:[%s801_s0 + $0x60] sm:$0xff]  ;;  %v561_v1 = vld [vmem:[%s801_s0 + $0x68] sm:$0xff]  ;;  %v578_v5 = vld [vmem:[%s801_s0 + $0x70] sm:$0xff]  ;;  %489 = vmatprep.subr.bf16.mxu0 %v533_v39  ;;  %481 = vmatprep.mubr.msk.f32.mxu0 %vm534_vm0, %v535_v46  ;;  %vm101_vm1 = vcmask 130112   ;;  %vm108_vm2 = vcmask 195712   ;;  %vm115_vm3 = vcmask 261312  }
   0x2   :  { %v566_v2 = vld [vmem:[%s801_s0] sm:$0xff]  ;;  %v53_v3 = vadd.f32 %v561_v1, %v556_v0  ;;  %v573_v4 = vld [vmem:[%s801_s0 + $0x8] sm:$0xff]  ;;  %v583_v6 = vld [vmem:[%s801_s0 + $0x78] sm:$0xff]  ;;  %440 = vmatprep.mubr.f32.mxu1 %v535_v46  ;;  %v91_v51 = vand.u32 127, %v90_v48  ;;  %v719_v56 = vshrl.u32 %v90_v48, 7  ;;  %vm122_vm4 = vcmask 326912  }
   0x3   :  { %v35_v7 = vadd.f32 %v573_v4, %v566_v2  ;;  %v590_v8 = vld [vmem:[%s801_s0 + $0x10] sm:$0xff]  ;;  %v595_v9 = vld [vmem:[%s801_s0 + $0x18] sm:$0xff]  ;;  %v56_v10 = vadd.f32 %v583_v6, %v578_v5  ;;  %v604_v12 = vld [vmem:[%s801_s0 + $0x80] sm:$0xff]  ;;  %vm129_vm5 = vcmask 392512   ;;  %vm160_vm6 = vcmask 1041409  }
   0x4   :  { %54 = vadd.xlane.f32.xlu1 %v53_v3  ;;  %v38_v11 = vadd.f32 %v595_v9, %v590_v8  ;;  %v609_v13 = vld [vmem:[%s801_s0 + $0x88] sm:$0xff]  ;;  %v614_v14 = vld [vmem:[%s801_s0 + $0x20] sm:$0xff]  ;;  %v628_v18 = vld [vmem:[%s801_s0 + $0x90] sm:$0xff]  ;;  %v96_v53 = vadd.s32 4294967288, %v91_v51  ;;  %v103_v54 = vadd.s32 4294967280, %v91_v51  ;;  %v110_v58 = vadd.s32 4294967272, %v91_v51 }
   0x5   :  { %36 = vadd.xlane.f32.xlu0 %v35_v7  ;;  %v619_v15 = vld [vmem:[%s801_s0 + $0x28] sm:$0xff]  ;;  %v59_v16 = vadd.f32 %v609_v13, %v604_v12  ;;  %v633_v19 = vld [vmem:[%s801_s0 + $0x98] sm:$0xff]  ;;  %v638_v20 = vld [vmem:[%s801_s0 + $0x30] sm:$0xff]  ;;  %v117_v59 = vadd.s32 4294967264, %v91_v51  ;;  %v94_v63 = vsub.s32 %v91_v51, %v719_v56  ;;  %vm162_vm7 = vcmask 392192  }
   0x6   :  { %v41_v17 = vadd.f32 %v619_v15, %v614_v14  ;;  %v643_v21 = vld [vmem:[%s801_s0 + $0x38] sm:$0xff]  ;;  %v62_v22 = vadd.f32 %v633_v19, %v628_v18  ;;  %v652_v24 = vld [vmem:[%s801_s0 + $0xa0] sm:$0xff]  ;;  %v657_v25 = vld [vmem:[%s801_s0 + $0xa8] sm:$0xff]  ;;  %v99_v60 = vsub.s32 %v96_v53, %v719_v56  ;;  %v106_v61 = vsub.s32 %v103_v54, %v719_v56 }
   0x7   :  { %v44_v23 = vadd.f32 %v643_v21, %v638_v20  ;;  %v662_v26 = vld [vmem:[%s801_s0 + $0x40] sm:$0xff]  ;;  %v667_v27 = vld [vmem:[%s801_s0 + $0x48] sm:$0xff]  ;;  %v65_v28 = vadd.f32 %v657_v25, %v652_v24  ;;  %v676_v30 = vld [vmem:[%s801_s0 + $0xb0] sm:$0xff]  ;;  %v113_v3 = vsub.s32 %v110_v58, %v719_v56  ;;  %vm240_vm8 = vcmask 1042432  }
   0x8   :  { %57 = vadd.xlane.f32.xlu1 %v56_v10  ;;  %v47_v29 = vadd.f32 %v667_v27, %v662_v26  ;;  %v681_v31 = vld [vmem:[%s801_s0 + $0xb8] sm:$0xff]  ;;  %v686_v32 = vld [vmem:[%s801_s0 + $0x50] sm:$0xff]  ;;  %v71_v36 = vld [vmem:[%s802_s1] sm:$0xff]  ;;  %v124_v10 = vadd.s32 4294967256, %v91_v51  ;;  %vm236_vm9 = vcmask 23552   ;;  %vm341_vm10 = vcmask 1043456  }
   0x9   :  { %39 = vadd.xlane.f32.xlu0 %v38_v11  ;;  %v691_v33 = vld [vmem:[%s801_s0 + $0x58] sm:$0xff]  ;;  %v68_v34 = vadd.f32 %v681_v31, %v676_v30  ;;  %v72_v37 = vld [vmem:[%s802_s1 + $0x8] sm:$0xff]  ;;  %v73_v40 = vld [vmem:[%s802_s1 + $0x10] sm:$0xff]  ;;  %v120_v11 = vsub.s32 %v117_v59, %v719_v56  ;;  %vm372_vm11 = vcmask 785408  }
   0xa   :  { %v50_v35 = vadd.f32 %v691_v33, %v686_v32  ;;  %v490_v38 = vpack.c.bf16 %v72_v37, %v71_v36  ;;  %v74_v41 = vld [vmem:[%s802_s1 + $0x18] sm:$0xff]  ;;  %v75_v43 = vld [vmem:[%s802_s1 + $0x20] sm:$0xff]  ;;  %v76_v44 = vld [vmem:[%s802_s1 + $0x28] sm:$0xff]  ;;  %v127_v36 = vsub.s32 %v124_v10, %v719_v56  ;;  %v349_v10 = vmul.f32 %v638_v20, %v638_v20 }
   0xb   :  { %v493_v42 = vpack.c.bf16 %v74_v41, %v73_v40  ;;  %v496_v45 = vpack.c.bf16 %v76_v44, %v75_v43  ;;  %v357_v20 = vmul.f32 %v578_v5, %v578_v5  ;;  %v345_v5 = vmul.f32 %v590_v8, %v590_v8 }
   0xc   :  { %60 = vadd.xlane.f32.xlu1 %v59_v16  ;;  %491 = vmatpush3.bf16.msra.mxu0 %v490_v38 }
   0xd   :  { %42 = vadd.xlane.f32.xlu0 %v41_v17  ;;  %492 = vmatprep.subr.bf16.mxu0 %v533_v39 }
  0x10   :  { %63 = vadd.xlane.f32.xlu1 %v62_v22  ;;  %494 = vmatpush3.bf16.msra.mxu0 %v493_v42 }
  0x11   :  { %45 = vadd.xlane.f32.xlu0 %v44_v23  ;;  %495 = vmatprep.subr.bf16.mxu0 %v533_v39 }
  0x14   :  { %66 = vadd.xlane.f32.xlu1 %v65_v28  ;;  %497 = vmatpush3.bf16.msra.mxu0 %v496_v45 }
  0x15   :  { %48 = vadd.xlane.f32.xlu0 %v47_v29  ;;  %484 = vmatprep.subr.mxu0 %v535_v46 }
  0x18   :  { %69 = vadd.xlane.f32.xlu1 %v68_v34 }
  0x19   :  { %51 = vadd.xlane.f32.xlu0 %v50_v35 }
  0x91   :  { %v55_v47 = vpop.xlane.xlu1 %54 }
  0x92   :  { %v37_v49 = vpop.xlane.xlu0 %36  ;;  %v134_v28 = vrot.slane %v55_v47, %v94_v63 }
  0x93   :  { %v95_v37 = vrot.slane %v37_v49, %v94_v63  ;;  %v356_v63 = vmul.f32 %v561_v1, %v561_v1  ;;  %v352_v1 = vmul.f32 %v667_v27, %v667_v27  ;;  %v359_v27 = vmul.f32 %v604_v12, %v604_v12 }
  0x95   :  { %v58_v50 = vpop.xlane.xlu1 %57 }
  0x96   :  { %v40_v52 = vpop.xlane.xlu0 %39  ;;  %v138_v16 = vrot.slane %v58_v50, %v99_v60 }
  0x97   :  { %v100_v17 = vrot.slane %v40_v52, %v99_v60 }
  0x98   :  { %v139_v40 = vsel %vm101_vm1, %v138_v16, %v134_v28 }
  0x99   :  { %v61_v55 = vpop.xlane.xlu1 %60  ;;  %v102_v42 = vsel %vm101_vm1, %v100_v17, %v95_v37  ;;  %v363_v37 = vmul.f32 %v652_v24, %v652_v24 }
  0x9a   :  { %v43_v57 = vpop.xlane.xlu0 %42  ;;  %v143_v22 = vrot.slane %v61_v55, %v106_v61 }
  0x9b   :  { %v107_v29 = vrot.slane %v43_v57, %v106_v61  ;;  %v77_v57 = vld [vmem:[%s802_s1 + $0x30] sm:$0x7] }
  0x9c   :  { %v144_v43 = vsel %vm108_vm2, %v143_v22, %v139_v40 }
  0x9d   :  { %v64_v62 = vpop.xlane.xlu1 %63  ;;  %v109_v45 = vsel %vm108_vm2, %v107_v29, %v102_v42  ;;  %v324_v42 = vsub.s32 0, %v719_v56 }
  0x9e   :  { %v46_v7 = vpop.xlane.xlu0 %45  ;;  %v148_v34 = vrot.slane %v64_v62, %v113_v3  ;;  %v355_v62 = vmul.f32 %v556_v0, %v556_v0  ;;  %v351_v0 = vmul.f32 %v662_v26, %v662_v26  ;;  %v362_v26 = vmul.f32 %v633_v19, %v633_v19 }
  0x9f   :  { %v114_v38 = vrot.slane %v46_v7, %v113_v3  ;;  %v358_v3 = vmul.f32 %v583_v6, %v583_v6  ;;  %v347_v7 = vmul.f32 %v614_v14, %v614_v14  ;;  %v353_v6 = vmul.f32 %v686_v32, %v686_v32 }
  0xa0   :  { %v149_v47 = vsel %vm115_vm3, %v148_v34, %v144_v43  ;;  %v354_v14 = vmul.f32 %v691_v33, %v691_v33  ;;  %v361_v32 = vmul.f32 %v628_v18, %v628_v18  ;;  %v344_v33 = vmul.f32 %v573_v4, %v573_v4 }
  0xa1   :  { %v67_v23 = vpop.xlane.xlu1 %66  ;;  %v116_v51 = vsel %vm115_vm3, %v114_v38, %v109_v45  ;;  %v508_v22 = vpack.c.bf16 %v353_v6, %v351_v0  ;;  %v510_v19 = vpack.c.bf16 %v358_v3, %v356_v63  ;;  %v512_v12 = vpack.c.bf16 %v357_v20, %v355_v62 }
  0xa2   :  { %v49_v35 = vpop.xlane.xlu0 %48  ;;  %v153_v39 = vrot.slane %v67_v23, %v120_v11  ;;  %v506_v17 = vpack.c.bf16 %v354_v14, %v352_v1  ;;  %v516_v34 = vpack.c.bf16 %v361_v32, %v359_v27  ;;  %v364_v18 = vmul.f32 %v657_v25, %v657_v25  ;;  %v321_v25 = vld [vmem:[%s802_s1 + $0x40] sm:$0xff] }
  0xa3   :  { %v121_v41 = vrot.slane %v49_v35, %v120_v11  ;;  %v350_v11 = vmul.f32 %v643_v21, %v643_v21  ;;  %v360_v21 = vmul.f32 %v609_v13, %v609_v13  ;;  %v504_v13 = vpack.c.bf16 %v349_v10, %v347_v7 }
  0xa4   :  { %v154_v49 = vsel %vm122_vm4, %v153_v39, %v149_v47  ;;  %v366_v35 = vmul.f32 %v681_v31, %v681_v31  ;;  %v365_v38 = vmul.f32 %v676_v30, %v676_v30  ;;  %v330_v31 = vsub.s32 1, %v719_v56  ;;  %v320_v30 = vld [vmem:[%s802_s1 + $0x38] sm:$0xf] }
  0xa5   :  { %v70_v44 = vpop.xlane.xlu1 %69  ;;  %v123_v53 = vsel %vm122_vm4, %v121_v41, %v116_v51  ;;  %v514_v29 = vpack.c.bf16 %v362_v26, %v360_v21  ;;  %v536_v43 = vmov 0  }
  0xa6   :  { %v158_v48 = vrot.slane %v70_v44, %v127_v36  ;;  %v52_v50 = vpop.xlane.xlu0 %51  ;;  %v518_v40 = vpack.c.bf16 %v366_v35, %v364_v18  ;;  %v520_v41 = vpack.c.bf16 %v365_v38, %v363_v37  ;;  %527 = vset.pattern.permute.xlu1 %v536_v43  ;;  %528 = vset.pattern.permute.xlu0 %v536_v43 }
  0xa7   :  { %v128_v52 = vrot.slane %v52_v50, %v127_v36  ;;  %369 = vperm.xlu1 %527, %v321_v25  }
  0xa8   :  { %v159_v54 = vsel %vm129_vm5, %v158_v48, %v154_v49 }
  0xa9   :  { %v130_v55 = vsel %vm129_vm5, %v128_v52, %v123_v53 }
  0xaa   :  { %v161_v58 = vsel %vm160_vm6, %v159_v54, %v130_v55 }
  0xab   :  { %482 = vmatmul.mubr.msk.f32.vlgmr.msra.gmra.mrb[0].mxu0 %vm162_vm7, %v161_v58 }
  0xac   :  { %485 = vmatpush3.msk.msra.mxu0 %vm240_vm8, %v77_v57  ;;  %486 = vmatprep.mubr.msk.f32.mxu0 %vm534_vm0, %v535_v46  ;;  %v348_v46 = vmul.f32 %v619_v15, %v619_v15  ;;  %v343_v15 = vmul.f32 %v566_v2, %v566_v2  ;;  %v346_v2 = vmul.f32 %v595_v9, %v595_v9 }
  0xae   :  { %v502_v16 = vpack.c.bf16 %v350_v11, %v348_v46  ;;  %v498_v23 = vpack.c.bf16 %v346_v2, %v344_v33  ;;  %v500_v28 = vpack.c.bf16 %v345_v5, %v343_v15 }
  0xb0   :  { %499 = vmatprep.subr.bf16.mxu1 %v498_v23 }
  0xb1   :  { %501 = vmatpush1.bf16.msra.mxu1 %v500_v28 }
  0xb2   :  { %503 = vmatprep.subr.bf16.mxu1 %v502_v16 }
  0xb5   :  { %505 = vmatpush1.bf16.msra.mxu1 %v504_v13 }
  0xb6   :  { %507 = vmatprep.subr.bf16.mxu1 %v506_v17 }
  0xb9   :  { %509 = vmatpush1.bf16.msra.mxu1 %v508_v22 }
  0xba   :  { %511 = vmatprep.subr.bf16.mxu1 %v510_v19 }
  0xbd   :  { %513 = vmatpush1.bf16.msra.mxu1 %v512_v12 }
  0xbe   :  { %515 = vmatprep.subr.bf16.mxu1 %v514_v29 }
  0xc1   :  { %517 = vmatpush1.bf16.msra.mxu1 %v516_v34 }
  0xc2   :  { %519 = vmatprep.subr.bf16.mxu1 %v518_v40 }
  0xc5   :  { %521 = vmatpush1.bf16.msra.mxu1 %v520_v41 }
 0x126   :  { %v370_v53 = vpop.permute.xlu1 %369 }
 0x17e   :  { %v231_v59 = vpop.f32.mrb[0].mxu0 }
 0x17f   :  { %v235_v60 = vmax.f32 %v231_v59, 0.0  ;;  %v483_v61 = vpop.f32.mrb[1].mxu0 }
 0x181   :  { %487 = vmatmul.mubr.msk.f32.vlgmr.msra.gmra.mrb[2].mxu0 %vm236_vm9, %v235_v60 }
 0x254   :  { %v310_v4 = vpop.f32.mrb[2].mxu0 }
 0x255   :  { %v458_v8 = vmul.f32 -1.442695, %v310_v4  ;;  %v488_v9 = vpop.f32.mrb[3].mxu0 }
 0x257   :  { %529 = vpow2.f32 %v458_v8 }
 0x261   :  { %v530_v36 = vpop.eup %529 }
 0x262   :  { %v317_v39 = vadd.f32 1.0, %v530_v36 }
 0x264   :  { %531 = vrcp.f32 %v317_v39 }
 0x26e   :  { %v532_v24 = vpop.eup %531 }
 0x26f   :  { %v331_v44 = vrot.slane %v532_v24, %v330_v31  ;;  %v325_v45 = vrot.slane %v532_v24, %v324_v42 }
 0x271   :  { %v332_v47 = vmul.f32 %v331_v44, %v320_v30  ;;  %v326_v48 = vmul.f32 %v325_v45, %v320_v30 }
 0x273   :  { %334 = vrot.lane.b32.xlu0 %v332_v47, %s537_s18  ;;  %v327_v49 = vsel %vm162_vm7, %v326_v48, 0.0 }
 0x2e5   :  { %v335_v50 = vpop.permute.xlu0 %334 }
 0x2e6   :  { %v337_v51 = vsel %vm162_vm7, 0.0, %v335_v50 }
 0x2e7   :  { %v339_v56 = vrot.slane %v337_v51, 4 }
 0x2e9   :  { %v342_v52 = vsel %vm341_vm10, %v327_v49, %v339_v56 }
 0x2ea   :  { %459 = vmatmul.mubr.msk.f32.vlgmr.msra.gmra.mrb[0].mxu1 %vm372_vm11, %v342_v52 }
 0x3bd   :  { %v442_v54 = vpop.f32.mrb[0].mxu1 }
 0x3be   :  { %v443_v55 = vadd.f32 %v442_v54, %v370_v53  ;;  %v444_v57 = vpop.f32.mrb[1].mxu1 }
 0x3bf   :  { %v445_v58 = vadd.f32 %v444_v57, %v370_v53 }
 0x3c0   :  { %v447_v59 = vmax.f32 %v443_v55, 0.0 }
 0x3c1   :  { %v448_v60 = vmax.f32 %v445_v58, 0.0 }
 0x3c2   :  { %449 = vst [vmem:[%s803_s2] sm:$0xff] %v447_v59 }
 0x3c3   :  { %450 = vst [vmem:[%s803_s2 + $0x8] sm:$0xff] %v448_v60 }

</bundles_post_ra>
